<compile_context>
chip_gen: v7x
topology: tpu7x:2x2x1
jax: 0.10.0
libtpu: 0.0.40
codegen_flags: <defaults>
</compile_context>

<pallas_src>
import jax
import jax.numpy as jnp
from jax import lax
from jax.experimental import pallas as pl
from jax.experimental.pallas import tpu as pltpu


_LANE = 128
_VMEM_BUDGET = 24 * 1024 * 1024      # double-buffered working-set cap (all chips)
_TARGET_STEP_FLOPS = 1 << 21         # amortize ~600-cycle fixed per-grid-step cost


# --------------------------------------------------------------------------- #
# helpers
# --------------------------------------------------------------------------- #
def _round_up(x: int, m: int) -> int:
    return (x + m - 1) // m * m


def _sublane_align(itemsize: int) -> int:
    # rows per vreg sublane group: f32 -> 8, bf16 -> 16, int8/fp8 -> 32
    return {4: 8, 2: 16, 1: 32}.get(itemsize, 8)


def _pick_tile(dim_padded: int, align: int, cap: int) -> int:
    """Largest multiple of `align` that divides `dim_padded` and is <= cap."""
    if dim_padded <= cap:
        return dim_padded
    best = align
    t = align
    while t <= cap:
        if dim_padded % t == 0:
            best = t
        t += align
    return best


def _pick_batch_block(B, nf, nm, per_batch_step_flops, fits_vmem, max_bb=8):
    """Number of batch elements fused per grid step.  Grows until the per-step
    MXU work amortizes the fixed step overhead, but never past the VMEM budget
    and never so far that fewer than 2 parallel grid units remain (megacore)."""
    if per_batch_step_flops >= _TARGET_STEP_FLOPS:
        return 1
    can_keep_two_parallel = B * nf * nm >= 2
    best = 1
    for cand in range(2, min(B, max_bb) + 1):
        if B % cand != 0:
            continue
        if can_keep_two_parallel and (B // cand) * nf * nm < 2:
            break
        if not fits_vmem(cand):
            break
        best = cand
        if per_batch_step_flops * cand >= _TARGET_STEP_FLOPS:
            break
    return best


# --------------------------------------------------------------------------- #
# kernels
# --------------------------------------------------------------------------- #
def _tile_matmul(x_tile, s_tile):
    # out_tile = x_tile @ s_tile^T : contract the shared N (last) axis.
    if x_tile.ndim == 2:                       # batch dim squeezed out
        dn = (((1,), (1,)), ((), ()))
    else:                                      # leading batch-block dim
        dn = (((2,), (2,)), ((0,), (0,)))
    return lax.dot_general(x_tile, s_tile, dimension_numbers=dn,
                           preferred_element_type=jnp.float32)


def _single_k_kernel(x_ref, s_ref, o_ref):
    # Whole contraction fits in one K tile: no accumulator round-trip needed.
    o_ref[...] = _tile_matmul(x_ref[...], s_ref[...]).astype(o_ref.dtype)


def _multi_k_kernel(x_ref, s_ref, o_ref, acc_ref):
    k = pl.program_id(3)

    @pl.when(k == 0)
    def _():
        acc_ref[...] = jnp.zeros_like(acc_ref)

    acc_ref[...] += _tile_matmul(x_ref[...], s_ref[...])

    @pl.when(k == pl.num_programs(3) - 1)
    def _():
        o_ref[...] = acc_ref[...].astype(o_ref.dtype)


# --------------------------------------------------------------------------- #
# wrapper
# --------------------------------------------------------------------------- #
def pool_1_to_1_matmul(x, spool):
    """x: (B, F, N, 1); spool: (B, M, N, 1). Returns (B, F, M, 1)."""
    B, F, N, one_x = x.shape
    Bs, M, Ns, one_s = spool.shape
    assert one_x == 1 and one_s == 1, "trailing singleton dim expected"
    assert Bs == B and Ns == N, "batch / contraction dims must match"

    x3 = x[..., 0]        # (B, F, N)
    s3 = spool[..., 0]    # (B, M, N)
    out_dtype = jnp.promote_types(x3.dtype, s3.dtype)

    x_item = jnp.dtype(x3.dtype).itemsize
    s_item = jnp.dtype(s3.dtype).itemsize
    o_item = jnp.dtype(out_dtype).itemsize

    # ---- padding: lane-dense output (M), 128-aligned contraction (N, zeros
    # are exact for the dot), dtype-aware sublane alignment for F.
    f_align = max(_sublane_align(x_item), _sublane_align(o_item))
    F_pad = _round_up(F, f_align)
    M_pad = _round_up(M, _LANE)
    N_pad = _round_up(N, _LANE)

    tf = _pick_tile(F_pad, f_align, 512)
    tm = _pick_tile(M_pad, _LANE, 512)
    tk = _pick_tile(N_pad, _LANE, 1024)
    nf, nm, nk = F_pad // tf, M_pad // tm, N_pad // tk
    multi_k = nk > 1

    def vmem_need(bb):
        need = 2 * bb * (tf * tk * x_item + tm * tk * s_item)   # dbl-buffered in
        need += 2 * bb * tf * tm * o_item                       # dbl-buffered out
        if multi_k:
            need += bb * tf * tm * 4                            # f32 accumulator
        return need

    per_batch_step_flops = 2 * tf * tm * tk
    bb = _pick_batch_block(B, nf, nm, per_batch_step_flops,
                           lambda c: vmem_need(c) <= _VMEM_BUDGET)

    if (F_pad, N_pad) != (F, N):
        x3 = jnp.pad(x3, ((0, 0), (0, F_pad - F), (0, N_pad - N)))
    if (M_pad, N_pad) != (M, N):
        s3 = jnp.pad(s3, ((0, 0), (0, M_pad - M), (0, N_pad - N)))

    b_blk = bb if bb > 1 else None            # None => batch dim squeezed in kernel
    x_block = (b_blk, tf, tk)
    s_block = (b_blk, tm, tk)
    o_block = (b_blk, tf, tm)

    cost = pl.CostEstimate(
        flops=2 * B * F_pad * M_pad * N_pad,
        transcendentals=0,
        bytes_accessed=(B * F_pad * N_pad * x_item) * nm
                       + (B * M_pad * N_pad * s_item) * nf
                       + B * F_pad * M_pad * o_item,
    )
    vmem_limit = int(min(48 * 1024 * 1024,
                         max(32 * 1024 * 1024, vmem_need(bb) + 8 * 1024 * 1024)))

    if multi_k:
        grid = (B // bb, nf, nm, nk)
        grid_spec = pltpu.PrefetchScalarGridSpec(
            num_scalar_prefetch=0,
            grid=grid,
            in_specs=[
                pl.BlockSpec(x_block, lambda b, i, j, k: (b, i, k)),
                pl.BlockSpec(s_block, lambda b, i, j, k: (b, j, k)),
            ],
            out_specs=pl.BlockSpec(o_block, lambda b, i, j, k: (b, i, j)),
            scratch_shapes=[pltpu.VMEM((bb, tf, tm) if bb > 1 else (tf, tm),
                                       jnp.float32)],
        )
        kernel = _multi_k_kernel
        dims = ("parallel", "parallel", "parallel", "arbitrary")
    else:
        grid = (B // bb, nf, nm)
        grid_spec = pltpu.PrefetchScalarGridSpec(
            num_scalar_prefetch=0,
            grid=grid,
            in_specs=[
                pl.BlockSpec(x_block, lambda b, i, j: (b, i, 0)),
                pl.BlockSpec(s_block, lambda b, i, j: (b, j, 0)),
            ],
            out_specs=pl.BlockSpec(o_block, lambda b, i, j: (b, i, j)),
        )
        kernel = _single_k_kernel
        dims = ("parallel", "parallel", "parallel")

    out_pad = pl.pallas_call(
        kernel,
        out_shape=jax.ShapeDtypeStruct((B, F_pad, M_pad), out_dtype),
        grid_spec=grid_spec,
        compiler_params=pltpu.CompilerParams(
            dimension_semantics=dims,
            vmem_limit_bytes=vmem_limit,
        ),
        cost_estimate=cost,
    )(x3, s3)

    return out_pad[:, :F, :M][..., None]      # (B, F, M, 1)


def _reference(x, spool):
    # mirrors: torch.matmul(x.squeeze(3), Spool.transpose(1,2).squeeze(3)).unsqueeze(3)
    return jnp.einsum('bfn,bmn->bfm', x[..., 0], spool[..., 0])[..., None]


if __name__ == "__main__":
    key = jax.random.PRNGKey(0)
    k1, k2, k3, k4, k5, k6 = jax.random.split(key, 6)

    # ---- primary check: shapes the module implies (tiny per-batch matmul) ----
    B, F, N, M = 2, 32, 16, 8
    x = jax.random.normal(k1, (B, F, N, 1), dtype=jnp.float32)
    spool = jax.random.normal(k2, (B, M, N, 1), dtype=jnp.float32)
    out = jax.block_until_ready(pool_1_to_1_matmul(x, spool))
    assert out.shape == (B, F, M, 1)
    assert jnp.allclose(out, _reference(x, spool), atol=1e-4, rtol=1e-4)

    # ---- multi-K path (reduction split over several K tiles); integer-valued
    # inputs so kernel and XLA reference match exactly regardless of MXU mode.
    B, F, N, M = 2, 32, 1100, 8
    x = jnp.round(jax.random.normal(k3, (B, F, N, 1)) * 2.0).astype(jnp.float32)
    spool = jnp.round(jax.random.normal(k4, (B, M, N, 1)) * 2.0).astype(jnp.float32)
    out = jax.block_until_ready(pool_1_to_1_matmul(x, spool))
    assert out.shape == (B, F, M, 1)
    assert jnp.allclose(out, _reference(x, spool), atol=1e-3, rtol=1e-3)

    # ---- batch-blocked path (several tiny batches fused per grid step) ----
    B, F, N, M = 8, 16, 16, 8
    x = jnp.round(jax.random.normal(k5, (B, F, N, 1)) * 2.0).astype(jnp.float32)
    spool = jnp.round(jax.random.normal(k6, (B, M, N, 1)) * 2.0).astype(jnp.float32)
    out = jax.block_until_ready(pool_1_to_1_matmul(x, spool))
    assert out.shape == (B, F, M, 1)
    assert jnp.allclose(out, _reference(x, spool), atol=1e-3, rtol=1e-3)

    print("KERNEL_OK")
</pallas_src>

<mosaic_0001>
module attributes {stable_mosaic.version = 11 : i64} {
  func.func @_single_k_kernel(%arg0: i32, %arg1: i32, %arg2: i32, %arg3: memref<1x32x128xf32, #tpu.memory_space<vmem>>, %arg4: memref<1x128x128xf32, #tpu.memory_space<vmem>>, %arg5: memref<1x32x128xf32, #tpu.memory_space<vmem>>) attributes {dimension_semantics = [#tpu.dimension_semantics<parallel>, #tpu.dimension_semantics<parallel>, #tpu.dimension_semantics<parallel>], iteration_bounds = array<i64: 2, 1, 1>, scalar_prefetch = 0 : i64, scratch_operands = 0 : i64, tpu.core_type = #tpu.core_type<tc>, window_params = [{transform_indices = @transform_0, window_bounds = array<i64: 1, 32, 128>}, {transform_indices = @transform_1, window_bounds = array<i64: 1, 128, 128>}, {transform_indices = @transform_2, window_bounds = array<i64: 1, 32, 128>}]} {
    %c0 = arith.constant 0 : index
    %c0_0 = arith.constant 0 : index
    %c0_1 = arith.constant 0 : index
    %0 = vector.load %arg3[%c0, %c0_0, %c0_1] : memref<1x32x128xf32, #tpu.memory_space<vmem>>, vector<1x32x128xf32>
    %1 = vector.shape_cast %0 : vector<1x32x128xf32> to vector<32x128xf32>
    %c0_2 = arith.constant 0 : index
    %c0_3 = arith.constant 0 : index
    %c0_4 = arith.constant 0 : index
    %2 = vector.load %arg4[%c0_2, %c0_3, %c0_4] : memref<1x128x128xf32, #tpu.memory_space<vmem>>, vector<1x128x128xf32>
    %3 = vector.shape_cast %2 : vector<1x128x128xf32> to vector<128x128xf32>
    %cst = arith.constant dense<0.000000e+00> : vector<32x128xf32>
    %4 = tpu.matmul %1, %3, %cst {dimension_numbers = #tpu.dot_dimension_numbers<[1], [1], [0], [0], [0, 0, 1, 0], [], []>} : vector<32x128xf32>, vector<128x128xf32>, vector<32x128xf32> -> vector<32x128xf32>
    %c0_5 = arith.constant 0 : index
    %c0_6 = arith.constant 0 : index
    %c0_7 = arith.constant 0 : index
    %5 = vector.load %arg5[%c0_5, %c0_6, %c0_7] : memref<1x32x128xf32, #tpu.memory_space<vmem>>, vector<1x32x128xf32>
    %6 = vector.shape_cast %5 : vector<1x32x128xf32> to vector<32x128xf32>
    %7 = vector.shape_cast %4 : vector<32x128xf32> to vector<1x32x128xf32>
    tpu.vector_store %arg5[%c0_5, %c0_6, %c0_7], %7 {strides = array<i32>} : memref<1x32x128xf32, #tpu.memory_space<vmem>>, vector<1x32x128xf32>,
    return
  }
  func.func @transform_0(%arg0: i32, %arg1: i32, %arg2: i32) -> (i32, i32, i32) {
    %c0_i32 = arith.constant 0 : i32
    %c0_i32_0 = arith.constant 0 : i32
    return %arg0, %arg1, %c0_i32 : i32, i32, i32
  }
  func.func @transform_1(%arg0: i32, %arg1: i32, %arg2: i32) -> (i32, i32, i32) {
    %c0_i32 = arith.constant 0 : i32
    %c0_i32_0 = arith.constant 0 : i32
    return %arg0, %arg2, %c0_i32 : i32, i32, i32
  }
  func.func @transform_2(%arg0: i32, %arg1: i32, %arg2: i32) -> (i32, i32, i32) {
    %c0_i32 = arith.constant 0 : i32
    return %arg0, %arg1, %arg2 : i32, i32, i32
  }
}

</mosaic_0001>

<bundles_post_ra>
// kernel: tpu_custom_call.1
= control target key start
LH: loop header
LB: loop body
LE: loop exit
PB: predicated region body
PF: predicated region fallthrough
CT: control target
= control target key end

     0   :  { %7 = vsyncpa [#allocation3], 0  ;;  %s1107_s0 = inlined_call_operand.hbm [shape: f32[2,32,128], index: 0, kind: input, shape index: {}]   ;;  %s1108_s1 = inlined_call_operand.hbm [shape: f32[2,128,128], index: 1, kind: input, shape index: {}]   ;;  %s1109_s2 = inlined_call_operand.hbm [shape: f32[2,32,128], index: 2, kind: output, shape index: {}]  }
   0x1   :  { %9 = vsyncpa [#allocation3 + $0x1], 0 }
   0x2   :  { %10 = vsyncpa [#allocation6], 0 }
   0x3   :  { %12 = vsyncpa [#allocation6 + $0x1], 0 }
   0x4   :  { %13 = vsyncpa [#allocation4], 0 }
   0x5   :  { %15 = vsyncpa [#allocation4 + $0x1], 0  ;;  %s848_s9 = smov 0   ;;  %s850_s10 = smov 0  }
   0x6   :  { %s852_s11 = smov 0   ;;  %s854_s12 = smov 0  }
   0x7   :  { %s856_s13 = smov 0   ;;  %s858_s14 = smov 0  }
   0x8 LB: > { %s479_s15 = sadd.s32 4294967295, %s824_s14   ;;  %s480_s16 = sadd.s32 4294967294, %s824_s14   ;;  %s824_s14 = sphi %s858_s14, %s21_s14   ;;  %s820_s13 = sphi %s856_s13, %s1127_s13   ;;  %s816_s12 = sphi %s854_s12, %s1126_s12   ;;  %s812_s11 = sphi %s852_s11, %s1125_s11   ;;  %s808_s10 = sphi %s850_s10, %s1124_s10   ;;  %s804_s9 = sphi %s848_s9, %s1123_s9  }
   0x9   : > { %s40_s17 = sadd.s32 1, %s820_s13  ;;  %s49_s18 = sadd.s32 1, %s812_s11 }
   0xa   : > { %p42_p0 = scmp.ge.s32.totalorder %s40_s17, 2  ;;  %p56_p1 = scmp.ne.s32.totalorder %s812_s11, %s808_s10 }
   0xb   : > { %p57_p2 = scmp.eq.s32.totalorder %s824_s14, 0  ;;  %p62_p3 = scmp.ne.s32.totalorder %s808_s10, %s804_s9 }
   0xc   : > { %s1129_s17 = smov (%p42_p0, %s40_s17), 0  ;;  %p63_p5 = scmp.eq.s32.totalorder %s479_s15, 0 }
   0xd   : > { %p889_p4 = por %p57_p2, %p56_p1  ;;  %s44_s20 = ssub.s32 %s820_s13, %s1129_s17 }
   0xe   : > { %p118_p6 = scmp.eq.s32.totalorder %s479_s15, 1  ;;  %p47_p7 = scmp.eq.s32.totalorder %s44_s20, 0 }
   0xf   : > { %p895_p8 = por %p63_p5, %p62_p3  ;;  %p124_p10 = scmp.eq.s32.totalorder %s480_s16, 1 }
  0x10   : > { %p899_p9 = por %p118_p6, %p56_p1  ;;  %p624_p13 = scmp.lt.s32.totalorder %s824_s14, 2 }
  0x11   : > { %s1113_s21 = scalar_select %p895_p8, 1, 0 }
  0x12   : > { %s1114_s22 = scalar_select %p899_p9, 1, 0 }
  0x13   : > { %s904_s23 = scalar_select %p47_p7, %s812_s11, %s49_s18  }
  0x14   : > { %p906_p11 = por %p124_p10, %p62_p3  ;;  %s913_s25 = sand.u32 1, %s812_s11  }
  0x15   : > { %s483_s26 = sshll.u32 %s913_s25, 5  ;;  %s498_s27 = sshll.u32 %s820_s13, 9 }
  0x16   : > { %s1115_s24 = scalar_select %p906_p11, 1, 0 }
  0x17   : > { %s920_s30 = scalar_lea.hbm %s1107_s0, %s498_s27  ;;  %s148_s3 = scalar_lea.vmem [#allocation2], %s483_s26 }
  0x18   : > { %s157_s4 = sshll.u32 %s148_s3, 4  ;;  %p926_p0 = pnand %p624_p13, %p889_p4  ;;  %s922_s4 = int_to_ptr.vmem [resolvable:$true] %s157_s4 }
  0x19   : > { %s145_s6 = scalar_lea.sflag [#allocation3], %s913_s25  ;;  %s678_s7 = scalar_lea.hbm %s920_s30, 512 }
  0x1a   : > { %p679_p2 = scmp.ne.s32.totalorder %s920_s30, %s678_s7  ;;  %p680_p3 = pneg %p926_p0 }
  0x1b   : > { %s683_s16 = scalar_lea.hbm %s1107_s0, 1024  ;;  %p684_p4 = scmp.lt.u32.totalorder %s920_s30, %s1107_s0 }
  0x1c   : > { %p681_p5 = pnand %p680_p3, %p679_p2  ;;  %p685_p7 = scmp.lt.u32.totalorder %s683_s16, %s678_s7 }
  0x1d   : > { %p687_p13 = scmp.lt.u32.totalorder %s678_s7, %s920_s30 }
  0x1e   : > { %p682_p6 = pneg %p681_p5  ;;  %p686_p10 = por %p685_p7, %p684_p4 }
  0x20   : > { %p688_p12 = por %p687_p13, %p686_p10 }
  0x22   : > { %p689_p1 = pnand %p688_p12, %p682_p6 }
  0x24   : > { %692 = shalt.err (!%p689_p1)
}
  0x25   : > { %s693_s20 = scalar_lea.vmem %s922_s4, 512  ;;  %s826_s26 = smov [#allocation2]  }
  0x26   : > { %p694_p2 = scmp.ne.s32.totalorder %s922_s4, %s693_s20  ;;  %s698_s27 = sshll.u32 %s826_s26, 4  ;;  %s699_s27 = int_to_ptr.vmem [resolvable:$false] %s698_s27 }
  0x27   : > { %s700_s28 = scalar_lea.vmem %s699_s27, 1024  ;;  %p701_p9 = scmp.lt.s32.totalorder %s922_s4, %s699_s27 }
  0x28   : > { %p696_p5 = pnand %p694_p2, %p680_p3  ;;  %p702_p4 = scmp.lt.s32.totalorder %s700_s28, %s693_s20 }
  0x2a   : > { %p697_p11 = pneg %p696_p5  ;;  %p703_p7 = por %p702_p4, %p701_p9 }
  0x2c   : > { %p704_p10 = pnand %p703_p7, %p697_p11 }
  0x2e   : > { %707 = shalt.err (!%p704_p10)
}
  0x2f   : > { %s827_s29 = smov 128   ;;  %s828_s3 = smov 8  }
  0x30   : > { %616 = dma.hbm_to_vmem [thread:$0]  (!%p926_p0), %s920_s30, 512, %s922_s4, %s145_s6, %s827_s29, %s827_s29, %s828_s3  }
  0x31   : > { %p188_p9 = scmp.lt.s32.totalorder %s824_s14, 3  ;;  %s486_s7 = sshll.u32 %s913_s25, 7 }
  0x32   : > { %s499_s8 = sshll.u32 %s820_s13, 11  ;;  %p1117_p11 = scmp.ge.s32.totalorder %s824_s14, 1 }
  0x33   : > { %s974_s19 = scalar_lea.hbm %s1108_s1, %s499_s8  ;;  %s171_s20 = scalar_lea.vmem [#allocation5], %s486_s7 }
  0x34   : > { %p967_p12 = pnand %p1117_p11, %p188_p9  ;;  %s180_s26 = sshll.u32 %s171_s20, 4  ;;  %s976_s26 = int_to_ptr.vmem [resolvable:$true] %s180_s26 }
  0x35   : > { %s168_s30 = scalar_lea.sflag [#allocation6], %s913_s25  ;;  %s708_s4 = scalar_lea.hbm %s974_s19, 2048 }
  0x36   : > { %p709_p1 = scmp.ne.s32.totalorder %s974_s19, %s708_s4  ;;  %s713_s28 = scalar_lea.hbm %s1108_s1, 4096 }
  0x37   : > { %p714_p2 = scmp.lt.u32.totalorder %s974_s19, %s1108_s1  ;;  %p715_p5 = scmp.lt.u32.totalorder %s713_s28, %s708_s4 }
  0x38   : > { %p711_p6 = pnand %p709_p1, %p680_p3  ;;  %p717_p7 = scmp.lt.u32.totalorder %s708_s4, %s974_s19 }
  0x39   : > { %p716_p4 = por %p715_p5, %p714_p2 }
  0x3a   : > { %p712_p13 = pneg %p711_p6 }
  0x3b   : > { %p718_p10 = por %p717_p7, %p716_p4 }
  0x3d   : > { %p719_p9 = pnand %p718_p10, %p712_p13 }
  0x3f   : > { %722 = shalt.err (!%p719_p9)
}
  0x40   : > { %s723_s7 = scalar_lea.vmem %s976_s26, 2048  ;;  %s829_s18 = smov [#allocation5]  }
  0x41   : > { %p724_p11 = scmp.ne.s32.totalorder %s976_s26, %s723_s7  ;;  %s728_s20 = sshll.u32 %s829_s18, 4  ;;  %s729_s20 = int_to_ptr.vmem [resolvable:$false] %s728_s20 }
  0x42   : > { %s730_s6 = scalar_lea.vmem %s729_s20, 4096  ;;  %p731_p8 = scmp.lt.s32.totalorder %s976_s26, %s729_s20 }
  0x43   : > { %p726_p1 = pnand %p724_p11, %p680_p3  ;;  %p732_p2 = scmp.lt.s32.totalorder %s730_s6, %s723_s7 }
  0x45   : > { %p727_p6 = pneg %p726_p1  ;;  %p733_p5 = por %p732_p2, %p731_p8 }
  0x47   : > { %p734_p4 = pnand %p733_p5, %p727_p6 }
  0x49   : > { %737 = shalt.err (!%p734_p4)
}
  0x4a   : > { %619 = dma.hbm_to_vmem [thread:$0]  (!%p926_p0), %s974_s19, 2048, %s976_s26, %s168_s30, %s827_s29, %s827_s29, %s828_s3  }
  0x4b   : > { %192 = sbr.rel (%p967_p12) target bundleno = 381 (0x17d), region = 28  ;;  %s1010_s4 = sand.u32 (!%p967_p12), 1, %s808_s10  }
  0x4c   : > { %s490_s27 = sshll.u32 (!%p967_p12), %s1010_s4, 5  ;;  %s195_s5 = scalar_lea.sflag (!%p967_p12), [#allocation3], %s1010_s4 }
  0x4d   : > { %s1016_s28 = scalar_lea.vmem (!%p967_p12), [#allocation2], %s490_s27  ;;  %p1119_p8 = scmp.ne.s32.totalorder (!%p967_p12), %s1113_s21, 0 }
  0x52   : > { %791 = dma.done.wait (%p1119_p8), %s195_s5, 512  }
  0x53   : > { %793 = vsyncadd (%p1119_p8), %s195_s5, 4294966784  ;;  %s491_s25 = sshll.u32 %s1010_s4, 7  ;;  %s204_s29 = scalar_lea.sflag [#allocation6], %s1010_s4 }
  0x54   : > { %s1024_s3 = scalar_lea.vmem [#allocation5], %s491_s25 }
  0x55   : > { %795 = dma.done.wait (%p1119_p8), %s204_s29, 2048  }
  0x56   : > { %797 = vsyncadd (%p1119_p8), %s204_s29, 4294965248  ;;  %v240_v0 = vld [vmem:[%s1024_s3] sm:$0xff]  ;;  %v241_v1 = vld [vmem:[%s1024_s3 + $0x8] sm:$0xff]  ;;  %s232_s21 = scalar_lea.vmem [#allocation7], %s490_s27  ;;  %s500_s19 = sshll.u32 %s816_s12, 9 }
  0x57   : > { %v242_v2 = vld [vmem:[%s1024_s3 + $0x10] sm:$0xff]  ;;  %v559_v3 = vpack.c.bf16 %v241_v1, %v240_v0  ;;  %v243_v4 = vld [vmem:[%s1024_s3 + $0x18] sm:$0xff]  ;;  %v236_v6 = vld [vmem:[%s1016_s28] sm:$0xff]  ;;  %s362_s15 = sshll.u32 %s232_s21, 4  ;;  %s1058_s8 = scalar_lea.hbm %s1109_s2, %s500_s19  ;;  %s1053_s15 = int_to_ptr.vmem [resolvable:$true] %s362_s15 }
  0x58   : > { %v563_v5 = vpack.c.bf16 %v243_v4, %v242_v2  ;;  %v238_v7 = vld [vmem:[%s1016_s28 + $0x10] sm:$0xff]  ;;  %v244_v8 = vld [vmem:[%s1024_s3 + $0x20] sm:$0xff]  ;;  %v245_v9 = vld [vmem:[%s1024_s3 + $0x28] sm:$0xff]  ;;  %553 = vmatprep.mubr.f32.mxu0 %v236_v6  ;;  %s346_s16 = scalar_lea.sflag [#allocation4], %s1010_s4  ;;  %s738_s12 = scalar_lea.vmem %s1053_s15, 512 }
  0x59   : > { %560 = vmatprep.subr.bf16.mxu0 %v559_v3  ;;  %591 = vmatprep.subr.bf16.mxu1 %v559_v3  ;;  %v567_v10 = vpack.c.bf16 %v245_v9, %v244_v8  ;;  %v246_v11 = vld [vmem:[%s1024_s3 + $0x30] sm:$0xff]  ;;  %v247_v12 = vld [vmem:[%s1024_s3 + $0x38] sm:$0xff]  ;;  %v248_v14 = vld [vmem:[%s1024_s3 + $0x40] sm:$0xff]  ;;  %p739_p0 = scmp.ne.s32.totalorder %s1053_s15, %s738_s12  ;;  %p1120_p3 = scmp.ne.s32.totalorder %s1114_s22, 0 }
  0x5a   : > { %562 = vmatpush3.bf16.xpose.msra.mxu0 %v559_v3  ;;  %599 = vmatpush3.bf16.xpose.msra.mxu1 %v559_v3  ;;  %v571_v13 = vpack.c.bf16 %v247_v12, %v246_v11  ;;  %v249_v15 = vld [vmem:[%s1024_s3 + $0x48] sm:$0xff]  ;;  %v250_v17 = vld [vmem:[%s1024_s3 + $0x50] sm:$0xff]  ;;  %v251_v18 = vld [vmem:[%s1024_s3 + $0x58] sm:$0xff]  ;;  %s830_s7 = smov [#allocation7]  }
  0x5b   : > { %564 = vmatprep.subr.bf16.mxu0 %v563_v5  ;;  %592 = vmatprep.subr.bf16.mxu1 %v563_v5  ;;  %v575_v16 = vpack.c.bf16 %v249_v15, %v248_v14  ;;  %v579_v19 = vpack.c.bf16 %v251_v18, %v250_v17  ;;  %v252_v20 = vld [vmem:[%s1024_s3 + $0x60] sm:$0xff]  ;;  %v253_v21 = vld [vmem:[%s1024_s3 + $0x68] sm:$0xff]  ;;  %v254_v23 = vld [vmem:[%s1024_s3 + $0x70] sm:$0xff]  ;;  %p740_p12 = pnand %p739_p0, %p1120_p3  ;;  %s742_s18 = sshll.u32 %s830_s7, 4  ;;  %s743_s18 = int_to_ptr.vmem [resolvable:$false] %s742_s18 }
  0x5c   : > { %556 = vmatprep.mubr.f32.mxu1 %v238_v7  ;;  %v583_v22 = vpack.c.bf16 %v253_v21, %v252_v20  ;;  %v255_v24 = vld [vmem:[%s1024_s3 + $0x78] sm:$0xff]  ;;  %v237_v26 = vld [vmem:[%s1016_s28 + $0x8] sm:$0xff]  ;;  %s744_s20 = scalar_lea.vmem %s743_s18, 1024  ;;  %p745_p7 = scmp.lt.s32.totalorder %s1053_s15, %s743_s18 }
  0x5d   : > { %v587_v25 = vpack.c.bf16 %v255_v24, %v254_v23  ;;  %v239_v27 = vld [vmem:[%s1016_s28 + $0x18] sm:$0xff]  ;;  %p741_p13 = pneg %p740_p12  ;;  %p746_p10 = scmp.lt.s32.totalorder %s744_s20, %s738_s12 }
  0x5f   : > { %p747_p9 = por %p746_p10, %p745_p7 }
  0x61   : > { %p748_p11 = pnand %p747_p9, %p741_p13 }
  0x62   : > { %566 = vmatpush3.bf16.xpose.msra.mxu0 %v563_v5  ;;  %600 = vmatpush3.bf16.xpose.msra.mxu1 %v563_v5 }
  0x63   : > { %568 = vmatprep.subr.bf16.mxu0 %v567_v10  ;;  %593 = vmatprep.subr.bf16.mxu1 %v567_v10 }
  0x6a   : > { %570 = vmatpush3.bf16.xpose.msra.mxu0 %v567_v10  ;;  %601 = vmatpush3.bf16.xpose.msra.mxu1 %v567_v10 }
  0x6b   : > { %572 = vmatprep.subr.bf16.mxu0 %v571_v13  ;;  %594 = vmatprep.subr.bf16.mxu1 %v571_v13 }
  0x72   : > { %574 = vmatpush3.bf16.xpose.msra.mxu0 %v571_v13  ;;  %602 = vmatpush3.bf16.xpose.msra.mxu1 %v571_v13 }
  0x73   : > { %576 = vmatprep.subr.bf16.mxu0 %v575_v16  ;;  %595 = vmatprep.subr.bf16.mxu1 %v575_v16 }
  0x7a   : > { %578 = vmatpush3.bf16.xpose.msra.mxu0 %v575_v16  ;;  %603 = vmatpush3.bf16.xpose.msra.mxu1 %v575_v16 }
  0x7b   : > { %580 = vmatprep.subr.bf16.mxu0 %v579_v19  ;;  %596 = vmatprep.subr.bf16.mxu1 %v579_v19 }
  0x82   : > { %582 = vmatpush3.bf16.xpose.msra.mxu0 %v579_v19  ;;  %604 = vmatpush3.bf16.xpose.msra.mxu1 %v579_v19 }
  0x83   : > { %584 = vmatprep.subr.bf16.mxu0 %v583_v22  ;;  %597 = vmatprep.subr.bf16.mxu1 %v583_v22 }
  0x8a   : > { %586 = vmatpush3.bf16.xpose.msra.mxu0 %v583_v22  ;;  %605 = vmatpush3.bf16.xpose.msra.mxu1 %v583_v22 }
  0x8b   : > { %588 = vmatprep.subr.bf16.mxu0 %v587_v25  ;;  %598 = vmatprep.subr.bf16.mxu1 %v587_v25 }
  0x92   : > { %590 = vmatpush3.bf16.xpose.msra.mxu0 %v587_v25  ;;  %606 = vmatpush3.bf16.xpose.msra.mxu1 %v587_v25 }
  0x99   : > { %554 = vmatmul.mubr.f32.vlgmr.msra.gmra.mrb[0].mxu0 %v237_v26  ;;  %557 = vmatmul.mubr.f32.vlgmr.msra.gmra.mrb[0].mxu1 %v239_v27 }
 0x16c   : > { %v555_v28 = vpop.f32.mrb[0].mxu0  ;;  %v558_v29 = vpop.f32.mrb[0].mxu1 }
 0x16d   : > { %342 = vst [vmem:[%s232_s21 + $0x8] sm:$0xff] %v555_v28  ;;  %344 = vst [vmem:[%s232_s21 + $0x18] sm:$0xff] %v558_v29  ;;  %v322_v30 = vpop.f32.mrb[1].mxu0  ;;  %v332_v31 = vpop.f32.mrb[1].mxu1 }
 0x16e   : > { %341 = vst [vmem:[%s232_s21] sm:$0xff] %v322_v30  ;;  %343 = vst [vmem:[%s232_s21 + $0x10] sm:$0xff] %v332_v31 }
 0x16f   : > { %751 = shalt.err (!%p748_p11)
}
 0x170   : > { %s752_s6 = scalar_lea.hbm %s1058_s8, 512  ;;  %s756_s28 = scalar_lea.hbm %s1109_s2, 1024 }
 0x171   : > { %p753_p1 = scmp.ne.s32.totalorder %s1058_s8, %s752_s6  ;;  %p757_p5 = scmp.lt.u32.totalorder %s1058_s8, %s1109_s2 }
 0x172   : > { %p758_p4 = scmp.lt.u32.totalorder %s756_s28, %s752_s6  ;;  %p760_p0 = scmp.lt.u32.totalorder %s752_s6, %s1058_s8 }
 0x173   : > { %p754_p6 = pnand %p753_p1, %p1120_p3 }
 0x174   : > { %p759_p8 = por %p758_p4, %p757_p5 }
 0x175   : > { %p755_p2 = pneg %p754_p6 }
 0x176   : > { %p761_p12 = por %p760_p0, %p759_p8 }
 0x178   : > { %p762_p13 = pnand %p761_p12, %p755_p2 }
 0x17a   : > { %765 = shalt.err (!%p762_p13)
}
 0x17b   : > { %s831_s3 = smov 128   ;;  %s832_s21 = smov 8  }
 0x17c   : > { %611 = dma.vmem_to_hbm [thread:$0]  (%p1120_p3), %s1053_s15, 512, %s1058_s8, %s346_s16, %s831_s3, %s831_s3, %s832_s21  }
 0x17d PF: > { %s377_s19 = sand.u32 1, %s804_s9   ;;  %p1121_p7 = scmp.ne.s32.totalorder %s1115_s24, 0 }
 0x17e   : > { %p1122_p10 = scmp.ge.s32.totalorder %s824_s14, 2  ;;  %s378_s26 = scalar_lea.sflag [#allocation4], %s377_s19 }
 0x180   : > { %p621_p9 = pnand %p1122_p10, %p1121_p7 }
 0x182   : > { %799 = dma.done.wait (!%p621_p9), %s378_s26, 512  }
 0x183   : > { %801 = vsyncadd (!%p621_p9), %s378_s26, 4294966784  ;;  %s21_s14 = sadd.s32 1, %s824_s14   ;;  %s1123_s9 = smov %s808_s10 }
 0x184   : > { %p18_p11 = scmp.ge.s32.totalorder %s21_s14, 4   ;;  %s1124_s10 = smov %s812_s11 }
 0x185   : > { %s1125_s11 = smov %s904_s23  ;;  %s1126_s12 = smov %s820_s13 }
 0x186   : > { %s1127_s13 = smov %s1129_s17  ;;  %20 = sbr.rel (!%p18_p11) target bundleno = 8 (0x8), region = 86 }
 0x18d   :  { %383 = vsyncpa [#allocation3], 1 }
 0x18e   :  { %385 = vsyncpa [#allocation3 + $0x1], 1 }
 0x18f   :  { %386 = vsyncpa [#allocation6], 1 }
 0x190   :  { %388 = vsyncpa [#allocation6 + $0x1], 1 }
 0x191   :  { %389 = vsyncpa [#allocation4], 1 }
 0x192   :  { %391 = vsyncpa [#allocation4 + $0x1], 1 }

</bundles_post_ra>
